<compile_context>
chip_gen: v6e
topology: v6e:2x2x1
jax: 0.10.0
libtpu: 0.0.40
codegen_flags: <defaults>
</compile_context>

<pallas_src>
import math

import jax
import jax.numpy as jnp
from jax import lax
from jax.experimental import pallas as pl
from jax.experimental.pallas import tpu as pltpu

DIM = 128
LANE = 128


def _gelu_exact(x):
    # nn.GELU() default = exact erf-based GELU (computed in f32)
    return 0.5 * x * (1.0 + lax.erf(x * (1.0 / math.sqrt(2.0))))


# ----------------------------------------------------------------------------
# Fused Pallas kernel: all decoder layers (weights resident in VMEM)
# ----------------------------------------------------------------------------
def fused_transformer_kernel(x_ref, wqkv_ref, wo_ref, w1_ref, w2_ref, vec_ref,
                             xout_ref, x_sc):
    l = pl.program_id(1)
    n_layers = pl.num_programs(1)

    bt, S, D = x_ref.shape
    M = bt * S

    # Load the embedded+positional activations into the resident scratch once
    # per batch tile; it stays in VMEM across all layer iterations.
    @pl.when(l == 0)
    def _():
        x_sc[...] = x_ref[...].reshape(M, D).astype(jnp.float32)

    x = x_sc[...]                                   # (M, D) f32 residual stream
    x_bf = x.astype(jnp.bfloat16)

    # Per-layer weights: whole stacks are resident; select this layer's slice.
    wqkv = wqkv_ref[l]                              # (D, 3D) bf16
    wo = wo_ref[l]                                  # (D, D)  bf16
    w1 = w1_ref[l]                                  # (D, D)  bf16
    w2 = w2_ref[l]                                  # (D, D)  bf16
    vec = vec_ref[l]                                # (8, D)  f32 merged vectors
    # rows: 0=b_q 1=b_k 2=b_v 3=b_o 4=ln_g 5=ln_b 6=b1 7=b2

    # --- single-head causal self-attention (packed QKV, bf16 MXU inputs) ---
    qkv = jnp.dot(x_bf, wqkv, preferred_element_type=jnp.float32)   # (M, 3D)
    q = (qkv[:, 0 * D:1 * D] + vec[0:1]).reshape(bt, S, D).astype(jnp.bfloat16)
    k = (qkv[:, 1 * D:2 * D] + vec[1:2]).reshape(bt, S, D).astype(jnp.bfloat16)
    v = (qkv[:, 2 * D:3 * D] + vec[2:3]).reshape(bt, S, D).astype(jnp.bfloat16)

    scale = 1.0 / math.sqrt(D)
    scores = jnp.einsum('bqd,bkd->bqk', q, k,
                        preferred_element_type=jnp.float32) * scale  # (bt,S,S)

    # Causal mask built in-kernel (reference's +1.0 on unmasked entries is a
    # per-row softmax no-op and is dropped).
    row = lax.broadcasted_iota(jnp.int32, (bt, S, S), 1)
    col = lax.broadcasted_iota(jnp.int32, (bt, S, S), 2)
    scores = jnp.where(col <= row, scores, -1e9)
    # TODO(synk): switch to a KV-tiled (flash-style) inner loop once S*S*4
    # per batch exceeds a few MiB (long-sequence configs).

    scores = scores - jnp.max(scores, axis=-1, keepdims=True)
    p = jnp.exp(scores)
    p = p * pl.reciprocal(jnp.sum(p, axis=-1, keepdims=True), approx=True)

    attn = jnp.einsum('bqk,bkd->bqd', p.astype(jnp.bfloat16), v,
                      preferred_element_type=jnp.float32).reshape(M, D)
    attn = jnp.dot(attn.astype(jnp.bfloat16), wo,
                   preferred_element_type=jnp.float32) + vec[3:4]

    x1 = attn + x                                   # residual 1

    # --- FeedForward: LayerNorm -> Linear -> GELU -> Linear -> GELU (f32) ---
    mu = jnp.mean(x1, axis=-1, keepdims=True)
    var = jnp.mean((x1 - mu) ** 2, axis=-1, keepdims=True)
    xn = (x1 - mu) * lax.rsqrt(var + 1e-5)
    xn = xn * vec[4:5] + vec[5:6]

    h = jnp.dot(xn.astype(jnp.bfloat16), w1,
                preferred_element_type=jnp.float32) + vec[6:7]
    h = _gelu_exact(h)
    y = jnp.dot(h.astype(jnp.bfloat16), w2,
                preferred_element_type=jnp.float32) + vec[7:8]
    y = _gelu_exact(y)

    x2 = y + x1                                     # residual 2
    x_sc[...] = x2

    @pl.when(l == n_layers - 1)
    def _():
        xout_ref[...] = x2.reshape(bt, S, D).astype(xout_ref.dtype)


# ----------------------------------------------------------------------------
# Vocab projection kernel (tiled over rows and vocab lanes)
# ----------------------------------------------------------------------------
def vocab_proj_kernel(x_ref, w_ref, b_ref, o_ref):
    o_ref[...] = (jnp.dot(x_ref[...].astype(jnp.bfloat16), w_ref[...],
                          preferred_element_type=jnp.float32)
                  + b_ref[...]).astype(o_ref.dtype)


# ----------------------------------------------------------------------------
# Pallas wrappers
# ----------------------------------------------------------------------------
def _pick_batch_tile(B, S, max_rows=2048):
    # Largest divisor of B such that bt*S rows fit the VMEM row budget.
    best = 1
    for cand in range(1, B + 1):
        if B % cand == 0 and cand * S <= max_rows:
            best = cand
    # v7x has 2 TensorCores: when the whole batch fits one tile, prefer an
    # even number of batch tiles so the "parallel" axis can use both cores.
    if best == B and B > 1:
        for cand in range(best - 1, 0, -1):
            if B % cand == 0 and (B // cand) % 2 == 0 and cand * S <= max_rows:
                return cand
    return best


def _pick_row_tile(rows, cap=1024):
    if rows <= cap:
        return rows
    best = rows
    for cand in range(8, cap + 1, 8):
        if rows % cand == 0:
            best = cand
    return best if best <= cap else rows


def _pick_vocab_tile(Vp, cap=2048):
    if Vp <= cap:
        return Vp
    best = LANE
    for cand in range(LANE, cap + 1, LANE):
        if Vp % cand == 0:
            best = cand
    return best


def transformer_stack_pallas(x, params):
    B, S, D = x.shape
    L = params['w_qkv'].shape[0]

    bt = _pick_batch_tile(B, S)
    nbt = B // bt
    M_tile = bt * S

    grid = (nbt, L)

    def resident(shape):
        return pl.BlockSpec(shape, lambda b, l: (0,) * len(shape))

    in_specs = [
        pl.BlockSpec((bt, S, D), lambda b, l: (b, 0, 0)),   # activations
        resident((L, D, 3 * D)),                            # w_qkv (resident)
        resident((L, D, D)),                                # w_o
        resident((L, D, D)),                                # w1
        resident((L, D, D)),                                # w2
        resident((L, 8, D)),                                # merged vectors
    ]
    out_specs = pl.BlockSpec((bt, S, D), lambda b, l: (b, 0, 0))

    # VMEM budget (resident weights + pipelined act blocks + scratch + temps)
    weight_bytes = L * (D * 3 * D + 3 * D * D) * 2 + L * 8 * D * 4
    act_bytes = 4 * (M_tile * D * 4)                 # double-buffered in/out
    scratch_bytes = M_tile * D * 4
    interm_bytes = 3 * bt * S * S * 4 + 4 * M_tile * 3 * D * 4
    vmem_limit = int(min(48 * 1024 * 1024,
                         max(16 * 1024 * 1024,
                             2 * (weight_bytes + act_bytes + scratch_bytes
                                  + interm_bytes))))

    Mtot = B * S
    flops = int(L * (2 * Mtot * D * 3 * D + 4 * B * S * S * D
                     + 2 * Mtot * D * D + 4 * Mtot * D * D))
    transcendentals = int(L * (B * S * S + 2 * Mtot * D + Mtot))
    bytes_accessed = int(2 * Mtot * D * 4 + weight_bytes)

    return pl.pallas_call(
        fused_transformer_kernel,
        grid=grid,
        in_specs=in_specs,
        out_specs=out_specs,
        out_shape=jax.ShapeDtypeStruct((B, S, D), jnp.float32),
        scratch_shapes=[pltpu.VMEM((M_tile, D), jnp.float32)],
        compiler_params=pltpu.CompilerParams(
            dimension_semantics=("parallel", "arbitrary"),
            vmem_limit_bytes=vmem_limit),
        cost_estimate=pl.CostEstimate(flops=flops,
                                      transcendentals=transcendentals,
                                      bytes_accessed=bytes_accessed),
    )(x, params['w_qkv'], params['w_o'], params['w1'], params['w2'],
      params['layer_vec'])


def vocab_projection_pallas(x2d, w, b):
    Mrows, D = x2d.shape
    Vp = w.shape[1]
    tm = _pick_row_tile(Mrows)
    tv = _pick_vocab_tile(Vp)
    grid = (Mrows // tm, Vp // tv)

    vmem_limit = int(min(48 * 1024 * 1024,
                         max(16 * 1024 * 1024,
                             4 * (tm * D * 4 + D * tv * 2 + tv * 4
                                  + tm * tv * 4))))

    return pl.pallas_call(
        vocab_proj_kernel,
        grid=grid,
        in_specs=[pl.BlockSpec((tm, D), lambda i, j: (i, 0)),
                  pl.BlockSpec((D, tv), lambda i, j: (0, j)),
                  pl.BlockSpec((1, tv), lambda i, j: (0, j))],
        out_specs=pl.BlockSpec((tm, tv), lambda i, j: (i, j)),
        out_shape=jax.ShapeDtypeStruct((Mrows, Vp), jnp.float32),
        compiler_params=pltpu.CompilerParams(
            dimension_semantics=("parallel", "parallel"),
            vmem_limit_bytes=vmem_limit),
        cost_estimate=pl.CostEstimate(
            flops=2 * Mrows * D * Vp,
            transcendentals=0,
            bytes_accessed=(Mrows * D * 4 + D * Vp * 2 + Vp * 4
                            + Mrows * Vp * 4)),
    )(x2d, w, b)


# ----------------------------------------------------------------------------
# Model glue (embedding, positional encoding, parameter init)
# ----------------------------------------------------------------------------
def positional_encoding(seq_len, dim=DIM):
    pos = jnp.arange(seq_len, dtype=jnp.float32)[:, None]
    div = jnp.exp(jnp.arange(0, dim, 2, dtype=jnp.float32)
                  * (-math.log(10000.0) / dim))
    pe = jnp.zeros((seq_len, dim), jnp.float32)
    pe = pe.at[:, 0::2].set(jnp.sin(pos * div))
    pe = pe.at[:, 1::2].set(jnp.cos(pos * div))
    return pe


def _kaiming_uniform(key, shape, fan_in):
    bound = math.sqrt(6.0 / fan_in)
    return jax.random.uniform(key, shape, jnp.float32, -bound, bound)


def init_params(key, num_blocks, vocab_size, dim=DIM):
    Vp = ((vocab_size + LANE - 1) // LANE) * LANE
    params = {'vocab_size': vocab_size}

    key, k_emb = jax.random.split(key)
    params['embedding'] = _kaiming_uniform(k_emb, (vocab_size, dim), dim)

    wqkv, wo, w1, w2 = [], [], [], []
    for _ in range(num_blocks):
        key, kq, ko, k1, k2 = jax.random.split(key, 5)
        # stored pre-transposed so the kernel computes y = x @ W + b
        wqkv.append(_kaiming_uniform(kq, (dim, 3 * dim), dim))
        wo.append(_kaiming_uniform(ko, (dim, dim), dim))
        w1.append(_kaiming_uniform(k1, (dim, dim), dim))
        w2.append(_kaiming_uniform(k2, (dim, dim), dim))

    L = num_blocks
    # matmul weights in bf16 (MXU-native, halves resident weight bytes)
    params['w_qkv'] = jnp.stack(wqkv).astype(jnp.bfloat16)        # (L, D, 3D)
    params['w_o'] = jnp.stack(wo).astype(jnp.bfloat16)            # (L, D, D)
    params['w1'] = jnp.stack(w1).astype(jnp.bfloat16)             # (L, D, D)
    params['w2'] = jnp.stack(w2).astype(jnp.bfloat16)             # (L, D, D)

    # Merged per-layer small vectors: one (8, D) f32 tile per layer.
    # rows: 0=b_q 1=b_k 2=b_v 3=b_o 4=ln_g 5=ln_b 6=b1 7=b2
    vec = jnp.zeros((L, 8, dim), jnp.float32)
    vec = vec.at[:, 4, :].set(1.0)                                # LN gamma
    params['layer_vec'] = vec

    key, k_out = jax.random.split(key)
    out_w = _kaiming_uniform(k_out, (dim, vocab_size), dim)
    out_w = jnp.pad(out_w, ((0, 0), (0, Vp - vocab_size)))        # lane-pad V
    params['out_w'] = out_w.astype(jnp.bfloat16)                  # (D, Vp)
    params['out_b'] = jnp.zeros((1, Vp), jnp.float32)
    return params


def decoder_transformer_forward(tokens, params):
    # tokens: int32 (B, S); padding_mask is None in this synthetic run.
    # TODO(synk): padding_mask path (mask.unsqueeze(1) & causal) not wired in.
    B, S = tokens.shape
    x = jnp.take(params['embedding'], tokens, axis=0)             # (B, S, D)
    x = x + positional_encoding(S)[None, :, :]
    x = transformer_stack_pallas(x, params)                       # (B, S, D)
    logits_padded = vocab_projection_pallas(x.reshape(B * S, DIM),
                                            params['out_w'], params['out_b'])
    logits_padded = logits_padded.reshape(B, S, -1)               # (B, S, Vp)
    return logits_padded[:, :, :params['vocab_size']]


# ----------------------------------------------------------------------------
if __name__ == "__main__":
    B, S = 2, 8
    NUM_BLOCKS = 2
    VOCAB = 32

    key = jax.random.PRNGKey(0)
    key, k_tok, k_par = jax.random.split(key, 3)
    tokens = jax.random.randint(k_tok, (B, S), 0, VOCAB, dtype=jnp.int32)
    params = init_params(k_par, NUM_BLOCKS, VOCAB)

    logits = decoder_transformer_forward(tokens, params)
    logits = jax.block_until_ready(logits)

    assert logits.shape == (B, S, VOCAB)
    assert bool(jnp.all(jnp.isfinite(logits)))
    print("KERNEL_OK")
</pallas_src>

<mosaic_0001>
module attributes {stable_mosaic.version = 11 : i64} {
  func.func @fused_transformer_kernel(%arg0: i32, %arg1: i32, %arg2: memref<1x8x128xf32, #tpu.memory_space<vmem>>, %arg3: memref<2x128x384xbf16, #tpu.memory_space<vmem>>, %arg4: memref<2x128x128xbf16, #tpu.memory_space<vmem>>, %arg5: memref<2x128x128xbf16, #tpu.memory_space<vmem>>, %arg6: memref<2x128x128xbf16, #tpu.memory_space<vmem>>, %arg7: memref<2x8x128xf32, #tpu.memory_space<vmem>>, %arg8: memref<1x8x128xf32, #tpu.memory_space<vmem>>, %arg9: memref<8x128xf32, #tpu.memory_space<vmem>>) attributes {dimension_semantics = [#tpu.dimension_semantics<parallel>, #tpu.dimension_semantics<arbitrary>], iteration_bounds = array<i64: 2, 2>, scalar_prefetch = 0 : i64, scratch_operands = 1 : i64, tpu.core_type = #tpu.core_type<tc>, window_params = [{transform_indices = @transform_0, window_bounds = array<i64: 1, 8, 128>}, {pipeline_mode = #tpu.pipeline_mode<synchronous>, transform_indices = @transform_1, window_bounds = array<i64: 2, 128, 384>}, {pipeline_mode = #tpu.pipeline_mode<synchronous>, transform_indices = @transform_2, window_bounds = array<i64: 2, 128, 128>}, {pipeline_mode = #tpu.pipeline_mode<synchronous>, transform_indices = @transform_3, window_bounds = array<i64: 2, 128, 128>}, {pipeline_mode = #tpu.pipeline_mode<synchronous>, transform_indices = @transform_4, window_bounds = array<i64: 2, 128, 128>}, {pipeline_mode = #tpu.pipeline_mode<synchronous>, transform_indices = @transform_5, window_bounds = array<i64: 2, 8, 128>}, {transform_indices = @transform_6, window_bounds = array<i64: 1, 8, 128>}]} {
    %c0_i32 = arith.constant 0 : i32
    %0 = arith.cmpi eq, %arg1, %c0_i32 : i32
    %1 = arith.extui %0 : i1 to i32
    %c0_i32_0 = arith.constant 0 : i32
    %2 = arith.cmpi ne, %1, %c0_i32_0 : i32
    scf.if %2 {
      %c0_35 = arith.constant 0 : index
      %c0_36 = arith.constant 0 : index
      %c0_37 = arith.constant 0 : index
      %121 = vector.load %arg2[%c0_35, %c0_36, %c0_37] : memref<1x8x128xf32, #tpu.memory_space<vmem>>, vector<1x8x128xf32>
      %122 = vector.shape_cast %121 : vector<1x8x128xf32> to vector<8x128xf32>
      %c0_38 = arith.constant 0 : index
      %c0_39 = arith.constant 0 : index
      %123 = vector.load %arg9[%c0_38, %c0_39] : memref<8x128xf32, #tpu.memory_space<vmem>>, vector<8x128xf32>
      tpu.vector_store %arg9[%c0_38, %c0_39], %122 {strides = array<i32>} : memref<8x128xf32, #tpu.memory_space<vmem>>, vector<8x128xf32>,
    } else {
    }
    %c0 = arith.constant 0 : index
    %c0_1 = arith.constant 0 : index
    %3 = vector.load %arg9[%c0, %c0_1] : memref<8x128xf32, #tpu.memory_space<vmem>>, vector<8x128xf32>
    %4 = arith.truncf %3 : vector<8x128xf32> to vector<8x128xbf16>
    %5 = arith.index_cast %arg1 : i32 to index
    %c0_2 = arith.constant 0 : index
    %c0_3 = arith.constant 0 : index
    %6 = vector.load %arg3[%5, %c0_2, %c0_3] : memref<2x128x384xbf16, #tpu.memory_space<vmem>>, vector<1x128x384xbf16>
    %7 = vector.shape_cast %6 : vector<1x128x384xbf16> to vector<128x384xbf16>
    %8 = arith.index_cast %arg1 : i32 to index
    %c0_4 = arith.constant 0 : index
    %c0_5 = arith.constant 0 : index
    %9 = vector.load %arg4[%8, %c0_4, %c0_5] : memref<2x128x128xbf16, #tpu.memory_space<vmem>>, vector<1x128x128xbf16>
    %10 = vector.shape_cast %9 : vector<1x128x128xbf16> to vector<128x128xbf16>
    %11 = arith.index_cast %arg1 : i32 to index
    %c0_6 = arith.constant 0 : index
    %c0_7 = arith.constant 0 : index
    %12 = vector.load %arg5[%11, %c0_6, %c0_7] : memref<2x128x128xbf16, #tpu.memory_space<vmem>>, vector<1x128x128xbf16>
    %13 = vector.shape_cast %12 : vector<1x128x128xbf16> to vector<128x128xbf16>
    %14 = arith.index_cast %arg1 : i32 to index
    %c0_8 = arith.constant 0 : index
    %c0_9 = arith.constant 0 : index
    %15 = vector.load %arg6[%14, %c0_8, %c0_9] : memref<2x128x128xbf16, #tpu.memory_space<vmem>>, vector<1x128x128xbf16>
    %16 = vector.shape_cast %15 : vector<1x128x128xbf16> to vector<128x128xbf16>
    %17 = arith.index_cast %arg1 : i32 to index
    %c0_10 = arith.constant 0 : index
    %c0_11 = arith.constant 0 : index
    %18 = vector.load %arg7[%17, %c0_10, %c0_11] : memref<2x8x128xf32, #tpu.memory_space<vmem>>, vector<1x8x128xf32>
    %19 = vector.shape_cast %18 : vector<1x8x128xf32> to vector<8x128xf32>
    %cst = arith.constant dense<0.000000e+00> : vector<8x384xf32>
    %20 = tpu.matmul %4, %7, %cst {dimension_numbers = #tpu.dot_dimension_numbers<[1], [0], [0], [1], [0, 0, 1, 1], [], []>} : vector<8x128xbf16>, vector<128x384xbf16>, vector<8x384xf32> -> vector<8x384xf32>
    %21 = vector.extract_strided_slice %20 {offsets = [0, 0], sizes = [8, 128], strides = [1, 1]} : vector<8x384xf32> to vector<8x128xf32>
    %22 = vector.extract_strided_slice %19 {offsets = [0, 0], sizes = [1, 128], strides = [1, 1]} : vector<8x128xf32> to vector<1x128xf32>
    %23 = vector.broadcast %22 : vector<1x128xf32> to vector<8x128xf32>
    %24 = arith.addf %21, %23 : vector<8x128xf32>
    %25 = vector.shape_cast %24 : vector<8x128xf32> to vector<1x8x128xf32>
    %26 = arith.truncf %25 : vector<1x8x128xf32> to vector<1x8x128xbf16>
    %27 = vector.extract_strided_slice %20 {offsets = [0, 128], sizes = [8, 128], strides = [1, 1]} : vector<8x384xf32> to vector<8x128xf32>
    %28 = vector.extract_strided_slice %19 {offsets = [1, 0], sizes = [1, 128], strides = [1, 1]} : vector<8x128xf32> to vector<1x128xf32>
    %29 = vector.broadcast %28 : vector<1x128xf32> to vector<8x128xf32>
    %30 = arith.addf %27, %29 : vector<8x128xf32>
    %31 = vector.shape_cast %30 : vector<8x128xf32> to vector<1x8x128xf32>
    %32 = arith.truncf %31 : vector<1x8x128xf32> to vector<1x8x128xbf16>
    %33 = vector.extract_strided_slice %20 {offsets = [0, 256], sizes = [8, 128], strides = [1, 1]} : vector<8x384xf32> to vector<8x128xf32>
    %34 = vector.extract_strided_slice %19 {offsets = [2, 0], sizes = [1, 128], strides = [1, 1]} : vector<8x128xf32> to vector<1x128xf32>
    %35 = vector.broadcast %34 : vector<1x128xf32> to vector<8x128xf32>
    %36 = arith.addf %33, %35 : vector<8x128xf32>
    %37 = vector.shape_cast %36 : vector<8x128xf32> to vector<1x8x128xf32>
    %38 = arith.truncf %37 : vector<1x8x128xf32> to vector<1x8x128xbf16>
    "tpu.trace_start"() <{level = 10 : i32, message = "bqd,bkd->bqk"}> : () -> ()
    %cst_12 = arith.constant dense<0.000000e+00> : vector<1x8x8xf32>
    %39 = tpu.matmul %26, %32, %cst_12 {dimension_numbers = #tpu.dot_dimension_numbers<[2], [2], [1], [1], [0, 0, 0, 1, 1, 1], [0], [0]>} : vector<1x8x128xbf16>, vector<1x8x128xbf16>, vector<1x8x8xf32> -> vector<1x8x8xf32>
    "tpu.trace_stop"() : () -> ()
    %cst_13 = arith.constant 0.0883883461 : f32
    %40 = vector.broadcast %cst_13 : f32 to vector<1x8x8xf32>
    %41 = arith.mulf %39, %40 : vector<1x8x8xf32>
    %42 = tpu.iota {dimensions = array<i32: 1>} : vector<1x8x8xi32>
    %43 = tpu.iota {dimensions = array<i32: 2>} : vector<1x8x8xi32>
    %44 = arith.cmpi sle, %43, %42 : vector<1x8x8xi32>
    %cst_14 = arith.constant -1.000000e+09 : f32
    %45 = vector.broadcast %cst_14 : f32 to vector<1x8x8xf32>
    %46 = arith.select %44, %41, %45 : vector<1x8x8xi1>, vector<1x8x8xf32>
    %cst_15 = arith.constant dense<0xFF800000> : vector<1x8xf32>
    %47 = vector.multi_reduction <maximumf>, %46, %cst_15 [2] : vector<1x8x8xf32> to vector<1x8xf32>
    %48 = vector.shape_cast %47 : vector<1x8xf32> to vector<1x8x1xf32>
    %49 = vector.broadcast %48 : vector<1x8x1xf32> to vector<1x8x8xf32>
    %50 = arith.subf %46, %49 : vector<1x8x8xf32>
    %51 = math.exp %50 : vector<1x8x8xf32>
    %cst_16 = arith.constant dense<0.000000e+00> : vector<1x8xf32>
    %52 = vector.multi_reduction <add>, %51, %cst_16 [2] : vector<1x8x8xf32> to vector<1x8xf32>
    %53 = vector.shape_cast %52 : vector<1x8xf32> to vector<1x8x1xf32>
    %54 = tpu.reciprocal %53 {approx = true} : vector<1x8x1xf32> -> vector<1x8x1xf32>
    %55 = vector.broadcast %54 : vector<1x8x1xf32> to vector<1x8x8xf32>
    %56 = arith.mulf %51, %55 : vector<1x8x8xf32>
    %57 = arith.truncf %56 : vector<1x8x8xf32> to vector<1x8x8xbf16>
    "tpu.trace_start"() <{level = 10 : i32, message = "bqk,bkd->bqd"}> : () -> ()
    %cst_17 = arith.constant dense<0.000000e+00> : vector<1x8x128xf32>
    %58 = tpu.matmul %57, %38, %cst_17 {dimension_numbers = #tpu.dot_dimension_numbers<[2], [1], [1], [2], [0, 0, 0, 1, 1, 2], [0], [0]>} : vector<1x8x8xbf16>, vector<1x8x128xbf16>, vector<1x8x128xf32> -> vector<1x8x128xf32>
    "tpu.trace_stop"() : () -> ()
    %59 = vector.shape_cast %58 : vector<1x8x128xf32> to vector<8x128xf32>
    %60 = arith.truncf %59 : vector<8x128xf32> to vector<8x128xbf16>
    %cst_18 = arith.constant dense<0.000000e+00> : vector<8x128xf32>
    %61 = tpu.matmul %60, %10, %cst_18 {dimension_numbers = #tpu.dot_dimension_numbers<[1], [0], [0], [1], [0, 0, 1, 1], [], []>} : vector<8x128xbf16>, vector<128x128xbf16>, vector<8x128xf32> -> vector<8x128xf32>
    %62 = vector.extract_strided_slice %19 {offsets = [3, 0], sizes = [1, 128], strides = [1, 1]} : vector<8x128xf32> to vector<1x128xf32>
    %63 = vector.broadcast %62 : vector<1x128xf32> to vector<8x128xf32>
    %64 = arith.addf %61, %63 : vector<8x128xf32>
    %65 = arith.addf %64, %3 : vector<8x128xf32>
    %cst_19 = arith.constant dense<0.000000e+00> : vector<8xf32>
    %66 = vector.multi_reduction <add>, %65, %cst_19 [1] : vector<8x128xf32> to vector<8xf32>
    %67 = vector.shape_cast %66 : vector<8xf32> to vector<8x1xf32>
    %cst_20 = arith.constant 1.280000e+02 : f32
    %68 = vector.broadcast %cst_20 : f32 to vector<8x1xf32>
    %69 = arith.divf %67, %68 : vector<8x1xf32>
    %70 = vector.broadcast %69 : vector<8x1xf32> to vector<8x128xf32>
    %71 = arith.subf %65, %70 : vector<8x128xf32>
    %72 = arith.mulf %71, %71 : vector<8x128xf32>
    %cst_21 = arith.constant dense<0.000000e+00> : vector<8xf32>
    %73 = vector.multi_reduction <add>, %72, %cst_21 [1] : vector<8x128xf32> to vector<8xf32>
    %74 = vector.shape_cast %73 : vector<8xf32> to vector<8x1xf32>
    %cst_22 = arith.constant 1.280000e+02 : f32
    %75 = vector.broadcast %cst_22 : f32 to vector<8x1xf32>
    %76 = arith.divf %74, %75 : vector<8x1xf32>
    %77 = vector.broadcast %69 : vector<8x1xf32> to vector<8x128xf32>
    %78 = arith.subf %65, %77 : vector<8x128xf32>
    %cst_23 = arith.constant 9.99999974E-6 : f32
    %79 = vector.broadcast %cst_23 : f32 to vector<8x1xf32>
    %80 = arith.addf %76, %79 : vector<8x1xf32>
    %81 = math.rsqrt %80 : vector<8x1xf32>
    %82 = vector.broadcast %81 : vector<8x1xf32> to vector<8x128xf32>
    %83 = arith.mulf %78, %82 : vector<8x128xf32>
    %84 = vector.extract_strided_slice %19 {offsets = [4, 0], sizes = [1, 128], strides = [1, 1]} : vector<8x128xf32> to vector<1x128xf32>
    %85 = vector.broadcast %84 : vector<1x128xf32> to vector<8x128xf32>
    %86 = arith.mulf %83, %85 : vector<8x128xf32>
    %87 = vector.extract_strided_slice %19 {offsets = [5, 0], sizes = [1, 128], strides = [1, 1]} : vector<8x128xf32> to vector<1x128xf32>
    %88 = vector.broadcast %87 : vector<1x128xf32> to vector<8x128xf32>
    %89 = arith.addf %86, %88 : vector<8x128xf32>
    %90 = arith.truncf %89 : vector<8x128xf32> to vector<8x128xbf16>
    %cst_24 = arith.constant dense<0.000000e+00> : vector<8x128xf32>
    %91 = tpu.matmul %90, %13, %cst_24 {dimension_numbers = #tpu.dot_dimension_numbers<[1], [0], [0], [1], [0, 0, 1, 1], [], []>} : vector<8x128xbf16>, vector<128x128xbf16>, vector<8x128xf32> -> vector<8x128xf32>
    %92 = vector.extract_strided_slice %19 {offsets = [6, 0], sizes = [1, 128], strides = [1, 1]} : vector<8x128xf32> to vector<1x128xf32>
    %93 = vector.broadcast %92 : vector<1x128xf32> to vector<8x128xf32>
    %94 = arith.addf %91, %93 : vector<8x128xf32>
    %cst_25 = arith.constant 5.000000e-01 : f32
    %95 = vector.broadcast %cst_25 : f32 to vector<8x128xf32>
    %96 = arith.mulf %95, %94 : vector<8x128xf32>
    %cst_26 = arith.constant 0.707106769 : f32
    %97 = vector.broadcast %cst_26 : f32 to vector<8x128xf32>
    %98 = arith.mulf %94, %97 : vector<8x128xf32>
    %99 = math.erf %98 : vector<8x128xf32>
    %cst_27 = arith.constant 1.000000e+00 : f32
    %100 = vector.broadcast %cst_27 : f32 to vector<8x128xf32>
    %101 = arith.addf %100, %99 : vector<8x128xf32>
    %102 = arith.mulf %96, %101 : vector<8x128xf32>
    %103 = arith.truncf %102 : vector<8x128xf32> to vector<8x128xbf16>
    %cst_28 = arith.constant dense<0.000000e+00> : vector<8x128xf32>
    %104 = tpu.matmul %103, %16, %cst_28 {dimension_numbers = #tpu.dot_dimension_numbers<[1], [0], [0], [1], [0, 0, 1, 1], [], []>} : vector<8x128xbf16>, vector<128x128xbf16>, vector<8x128xf32> -> vector<8x128xf32>
    %105 = vector.extract_strided_slice %19 {offsets = [7, 0], sizes = [1, 128], strides = [1, 1]} : vector<8x128xf32> to vector<1x128xf32>
    %106 = vector.broadcast %105 : vector<1x128xf32> to vector<8x128xf32>
    %107 = arith.addf %104, %106 : vector<8x128xf32>
    %cst_29 = arith.constant 5.000000e-01 : f32
    %108 = vector.broadcast %cst_29 : f32 to vector<8x128xf32>
    %109 = arith.mulf %108, %107 : vector<8x128xf32>
    %cst_30 = arith.constant 0.707106769 : f32
    %110 = vector.broadcast %cst_30 : f32 to vector<8x128xf32>
    %111 = arith.mulf %107, %110 : vector<8x128xf32>
    %112 = math.erf %111 : vector<8x128xf32>
    %cst_31 = arith.constant 1.000000e+00 : f32
    %113 = vector.broadcast %cst_31 : f32 to vector<8x128xf32>
    %114 = arith.addf %113, %112 : vector<8x128xf32>
    %115 = arith.mulf %109, %114 : vector<8x128xf32>
    %116 = arith.addf %115, %65 : vector<8x128xf32>
    %c0_32 = arith.constant 0 : index
    %c0_33 = arith.constant 0 : index
    %117 = vector.load %arg9[%c0_32, %c0_33] : memref<8x128xf32, #tpu.memory_space<vmem>>, vector<8x128xf32>
    tpu.vector_store %arg9[%c0_32, %c0_33], %116 {strides = array<i32>} : memref<8x128xf32, #tpu.memory_space<vmem>>, vector<8x128xf32>,
    %c1_i32 = arith.constant 1 : i32
    %118 = arith.cmpi eq, %arg1, %c1_i32 : i32
    %119 = arith.extui %118 : i1 to i32
    %c0_i32_34 = arith.constant 0 : i32
    %120 = arith.cmpi ne, %119, %c0_i32_34 : i32
    scf.if %120 {
      %121 = vector.shape_cast %116 : vector<8x128xf32> to vector<1x8x128xf32>
      %c0_35 = arith.constant 0 : index
      %c0_36 = arith.constant 0 : index
      %c0_37 = arith.constant 0 : index
      %122 = vector.load %arg8[%c0_35, %c0_36, %c0_37] : memref<1x8x128xf32, #tpu.memory_space<vmem>>, vector<1x8x128xf32>
      tpu.vector_store %arg8[%c0_35, %c0_36, %c0_37], %121 {strides = array<i32>} : memref<1x8x128xf32, #tpu.memory_space<vmem>>, vector<1x8x128xf32>,
    } else {
    }
    return
  }
  func.func @transform_0(%arg0: i32, %arg1: i32) -> (i32, i32, i32) {
    %c0_i32 = arith.constant 0 : i32
    %c0_i32_0 = arith.constant 0 : i32
    %c0_i32_1 = arith.constant 0 : i32
    return %arg0, %c0_i32, %c0_i32_0 : i32, i32, i32
  }
  func.func @transform_1(%arg0: i32, %arg1: i32) -> (i32, i32, i32) {
    %c0_i32 = arith.constant 0 : i32
    %c0_i32_0 = arith.constant 0 : i32
    %c0_i32_1 = arith.constant 0 : i32
    %c0_i32_2 = arith.constant 0 : i32
    return %c0_i32, %c0_i32_0, %c0_i32_1 : i32, i32, i32
  }
  func.func @transform_2(%arg0: i32, %arg1: i32) -> (i32, i32, i32) {
    %c0_i32 = arith.constant 0 : i32
    %c0_i32_0 = arith.constant 0 : i32
    %c0_i32_1 = arith.constant 0 : i32
    %c0_i32_2 = arith.constant 0 : i32
    return %c0_i32, %c0_i32_0, %c0_i32_1 : i32, i32, i32
  }
  func.func @transform_3(%arg0: i32, %arg1: i32) -> (i32, i32, i32) {
    %c0_i32 = arith.constant 0 : i32
    %c0_i32_0 = arith.constant 0 : i32
    %c0_i32_1 = arith.constant 0 : i32
    %c0_i32_2 = arith.constant 0 : i32
    return %c0_i32, %c0_i32_0, %c0_i32_1 : i32, i32, i32
  }
  func.func @transform_4(%arg0: i32, %arg1: i32) -> (i32, i32, i32) {
    %c0_i32 = arith.constant 0 : i32
    %c0_i32_0 = arith.constant 0 : i32
    %c0_i32_1 = arith.constant 0 : i32
    %c0_i32_2 = arith.constant 0 : i32
    return %c0_i32, %c0_i32_0, %c0_i32_1 : i32, i32, i32
  }
  func.func @transform_5(%arg0: i32, %arg1: i32) -> (i32, i32, i32) {
    %c0_i32 = arith.constant 0 : i32
    %c0_i32_0 = arith.constant 0 : i32
    %c0_i32_1 = arith.constant 0 : i32
    %c0_i32_2 = arith.constant 0 : i32
    return %c0_i32, %c0_i32_0, %c0_i32_1 : i32, i32, i32
  }
  func.func @transform_6(%arg0: i32, %arg1: i32) -> (i32, i32, i32) {
    %c0_i32 = arith.constant 0 : i32
    %c0_i32_0 = arith.constant 0 : i32
    %c0_i32_1 = arith.constant 0 : i32
    return %arg0, %c0_i32, %c0_i32_0 : i32, i32, i32
  }
}

</mosaic_0001>

<bundles_post_ra>
// kernel: tpu_custom_call.1
= control target key start
LH: loop header
LB: loop body
LE: loop exit
PB: predicated region body
PF: predicated region fallthrough
CT: control target
= control target key end

     0   :  { %s2363_s0 = inlined_call_operand.hbm [shape: f32[2,8,128], index: 0, kind: input, shape index: {}]   ;;  %s2364_s1 = inlined_call_operand.hbm [shape: bf16[2,128,384], index: 1, kind: input, shape index: {}]   ;;  %s2365_s2 = inlined_call_operand.hbm [shape: bf16[2,128,128], index: 2, kind: input, shape index: {}]   ;;  %s2366_s3 = inlined_call_operand.hbm [shape: bf16[2,128,128], index: 3, kind: input, shape index: {}]   ;;  %s2367_s4 = inlined_call_operand.hbm [shape: bf16[2,128,128], index: 4, kind: input, shape index: {}]   ;;  %s2368_s5 = inlined_call_operand.hbm [shape: f32[2,8,128], index: 5, kind: input, shape index: {}]   ;;  %s2369_s6 = inlined_call_operand.hbm [shape: f32[2,8,128], index: 6, kind: output, shape index: {}]  }
   0x1   :  { %2372 = sst [smem:[#allocation21_spill]] %s2364_s1 }
   0x2   :  { %2373 = sst [smem:[#allocation22_spill]] %s2365_s2 }
   0x3   :  { %2374 = sst [smem:[#allocation23_spill]] %s2366_s3 }
   0x4   :  { %2375 = sst [smem:[#allocation24_spill]] %s2367_s4 }
   0x5   :  { %2376 = sst [smem:[#allocation25_spill]] %s2368_s5 }
   0x6   :  { %11 = vsyncpa [#allocation4], 0 }
   0x7   :  { %13 = vsyncpa [#allocation4 + $0x1], 0 }
   0x8   :  { %14 = vsyncpa [#allocation7], 0 }
   0x9   :  { %15 = vsyncpa [#allocation10], 0 }
   0xa   :  { %16 = vsyncpa [#allocation13], 0 }
   0xb   :  { %17 = vsyncpa [#allocation5], 0 }
   0xc   :  { %19 = vsyncpa [#allocation5 + $0x1], 0  ;;  %s1999_s21 = smov 0   ;;  %s2001_s22 = smov 0  }
   0xd   :  { %s2003_s23 = smov 0   ;;  %s2005_s24 = smov 0  }
   0xe   :  { %s2007_s25 = smov 0   ;;  %s2009_s26 = smov 0  }
   0xf   :  { %s2011_s27 = smov 0   ;;  %s2013_s28 = smov 0  }
  0x10 LB: > { %s1260_s29 = sadd.s32 4294967295, %s1946_s28   ;;  %p1262_p0 = scmp.ge.s32.totalorder %s1946_s28, 1  ;;  %s1946_s28 = sphi %s2013_s28, %s25_s28   ;;  %s1942_s27 = sphi %s2011_s27, %s2401_s27   ;;  %s1938_s26 = sphi %s2009_s26, %s2400_s26   ;;  %s1934_s25 = sphi %s2007_s25, %s2399_s25   ;;  %s1930_s24 = sphi %s2005_s24, %s2398_s24   ;;  %s1926_s23 = sphi %s2003_s23, %s2397_s23   ;;  %s1922_s22 = sphi %s2001_s22, %s2396_s22   ;;  %s1918_s21 = sphi %s1999_s21, %s2395_s21  }
  0x11   : > { %p2043_p1 = scmp.eq.s32.totalorder %s1260_s29, 0  ;;  %p199_p2 = scmp.lt.s32.totalorder %s1946_s28, 5 }
  0x12   : > { %s1948_s8 = smov [#allocation6]   ;;  %s1949_s11 = smov [#allocation9]  }
  0x13   : > { %p2048_p3 = pnand %p1262_p0, %p199_p2  ;;  %s211_s9 = sshll.u32 %s1948_s8, 4  ;;  %s212_s9 = int_to_ptr.vmem [resolvable:$true] %s211_s9 }
  0x14   : > { %s237_s12 = sshll.u32 %s1949_s11, 4  ;;  %s1691_s14 = scalar_lea.vmem %s212_s9, 6144  ;;  %s238_s12 = int_to_ptr.vmem [resolvable:$true] %s237_s12 }
  0x15   : > { %p1500_p4 = pneg %p2048_p3  ;;  %p1692_p7 = scmp.ne.s32.totalorder %s212_s9, %s1691_s14 }
  0x16   : > { %p1699_p10 = scmp.lt.s32.totalorder %s212_s9, %s212_s9  ;;  %p1700_p11 = scmp.lt.s32.totalorder %s1691_s14, %s1691_s14 }
  0x17   : > { %p2056_p5 = pnand %p1500_p4, %p2043_p1 }
  0x18   : > { %p1701_p12 = por %p1700_p11, %p1699_p10 }
  0x19   : > { %p2062_p6 = pneg %p2056_p5 }
  0x1b   : > { %p1694_p8 = pnand %p1692_p7, %p2062_p6 }
  0x1d   : > { %p1695_p9 = pneg %p1694_p8 }
  0x1f   : > { %p1702_p13 = pnand %p1701_p12, %p1695_p9 }
  0x21   : > { %1705 = shalt.err (!%p1702_p13)
}
  0x22   : > { %s1950_s15 = smov 192   ;;  %s1951_s16 = smov 12  }
  0x23   : > { %s2381_s1 = sld [smem:[#allocation21_spill]]  ;;  %s1952_s19 = smov [#allocation8]  }
  0x24   : > { %s224_s20 = sshll.u32 %s1952_s19, 4  ;;  %s1717_s8 = scalar_lea.vmem %s238_s12, 2048  ;;  %s225_s20 = int_to_ptr.vmem [resolvable:$true] %s224_s20 }
  0x25   : > { %p1718_p0 = scmp.ne.s32.totalorder %s238_s12, %s1717_s8  ;;  %p1725_p7 = scmp.lt.s32.totalorder %s238_s12, %s238_s12 }
  0x26   : > { %p1726_p8 = scmp.lt.s32.totalorder %s1717_s8, %s1717_s8 }
  0x27   : > { %p1720_p2 = pnand %p1718_p0, %p2062_p6 }
  0x28   : > { %p1727_p9 = por %p1726_p8, %p1725_p7 }
  0x29   : > { %1503 = dma.hbm_to_vmem [thread:$0]  (!%p2056_p5), %s2381_s1, 6144, %s212_s9, [#allocation7], %s1950_s15, %s1950_s15, %s1951_s16  }
  0x2a   : > { %p1721_p4 = pneg %p1720_p2 }
  0x2c   : > { %p1728_p10 = pnand %p1727_p9, %p1721_p4 }
  0x2e   : > { %1731 = shalt.err (!%p1728_p10)
}
  0x2f   : > { %s1953_s11 = smov 64   ;;  %s1954_s14 = smov 4  }
  0x30   : > { %s2382_s3 = sld [smem:[#allocation23_spill]]  ;;  %s1743_s16 = scalar_lea.vmem %s225_s20, 2048 }
  0x31   : > { %p1744_p11 = scmp.ne.s32.totalorder %s225_s20, %s1743_s16  ;;  %p1751_p0 = scmp.lt.s32.totalorder %s225_s20, %s225_s20 }
  0x32   : > { %p1752_p2 = scmp.lt.s32.totalorder %s1743_s16, %s1743_s16 }
  0x33   : > { %p1746_p12 = pnand %p1744_p11, %p2062_p6 }
  0x34   : > { %p1753_p4 = por %p1752_p2, %p1751_p0 }
  0x35   : > { %p1747_p13 = pneg %p1746_p12 }
  0x36   : > { %1509 = dma.hbm_to_vmem [thread:$0]  (!%p2056_p5), %s2382_s3, 2048, %s238_s12, [#allocation10], %s1953_s11, %s1953_s11, %s1954_s14  }
  0x37   : > { %p1754_p7 = pnand %p1753_p4, %p1747_p13 }
  0x39   : > { %1757 = shalt.err (!%p1754_p7)
}
  0x3a   : > { %s2383_s2 = sld [smem:[#allocation22_spill]]  ;;  %s1955_s12 = smov [#allocation11]  }
  0x3b   : > { %s250_s19 = sshll.u32 %s1955_s12, 4  ;;  %s1956_s8 = smov [#allocation12]   ;;  %s251_s19 = int_to_ptr.vmem [resolvable:$true] %s250_s19 }
  0x3c   : > { %s263_s9 = sshll.u32 %s1956_s8, 4  ;;  %s1769_s15 = scalar_lea.vmem %s251_s19, 2048  ;;  %s264_s9 = int_to_ptr.vmem [resolvable:$true] %s263_s9 }
  0x3d   : > { %p1770_p8 = scmp.ne.s32.totalorder %s251_s19, %s1769_s15  ;;  %p1777_p11 = scmp.lt.s32.totalorder %s251_s19, %s251_s19 }
  0x3e   : > { %p1778_p12 = scmp.lt.s32.totalorder %s1769_s15, %s1769_s15 }
  0x3f   : > { %p1772_p9 = pnand %p1770_p8, %p2062_p6 }
  0x40   : > { %1506 = dma.hbm_to_vmem [thread:$0]  (!%p2056_p5), %s2383_s2, 2048, %s225_s20, [#allocation7], %s1953_s11, %s1953_s11, %s1954_s14  }
  0x41   : > { %p1773_p10 = pneg %p1772_p9  ;;  %p1779_p13 = por %p1778_p12, %p1777_p11 }
  0x43   : > { %p1780_p0 = pnand %p1779_p13, %p1773_p10 }
  0x45   : > { %1783 = shalt.err (!%p1780_p0)
}
  0x46   : > { %s2384_s4 = sld [smem:[#allocation24_spill]]  ;;  %s1795_s17 = scalar_lea.vmem %s264_s9, 256 }
  0x47   : > { %p1796_p2 = scmp.ne.s32.totalorder %s264_s9, %s1795_s17  ;;  %p1803_p8 = scmp.lt.s32.totalorder %s264_s9, %s264_s9 }
  0x48   : > { %p1804_p9 = scmp.lt.s32.totalorder %s1795_s17, %s1795_s17 }
  0x49   : > { %p1798_p4 = pnand %p1796_p2, %p2062_p6 }
  0x4a   : > { %p1805_p10 = por %p1804_p9, %p1803_p8 }
  0x4b   : > { %p1799_p7 = pneg %p1798_p4 }
  0x4c   : > { %1512 = dma.hbm_to_vmem [thread:$0]  (!%p2056_p5), %s2384_s4, 2048, %s251_s19, [#allocation10], %s1953_s11, %s1953_s11, %s1954_s14  }
  0x4d   : > { %p1806_p11 = pnand %p1805_p10, %p1799_p7 }
  0x4f   : > { %1809 = shalt.err (!%p1806_p11)
}
  0x50   : > { %s1957_s18 = smov 128   ;;  %s1958_s13 = smov 8  }
  0x51   : > { %s2385_s5 = sld [smem:[#allocation25_spill]]  ;;  %s1261_s12 = sadd.s32 4294967294, %s1946_s28  }
  0x52   : > { %s34_s19 = sadd.s32 1, %s1938_s26  ;;  %s37_s8 = sadd.s32 1, %s1942_s27 }
  0x53   : > { %p35_p6 = scmp.ge.s32.totalorder %s34_s19, 2  ;;  %s44_s15 = sadd.s32 1, %s1926_s23 }
  0x54   : > { %p51_p12 = scmp.ne.s32.totalorder %s1926_s23, %s1922_s22  ;;  %p52_p13 = scmp.eq.s32.totalorder %s1946_s28, 0 }
  0x55   : > { %s2403_s19 = smov (%p35_p6, %s34_s19), 0  ;;  %s2405_s8 = smov (!%p35_p6, %s37_s8), %s1942_s27 }
  0x56   : > { %p2120_p0 = por %p52_p13, %p51_p12  ;;  %p39_p2 = scmp.ge.s32.totalorder %s2405_s8, 2 }
  0x57   : > { %1515 = dma.hbm_to_vmem [thread:$0]  (!%p2056_p5), %s2385_s5, 256, %s264_s9, [#allocation13], %s1957_s18, %s1957_s18, %s1958_s13  }
  0x58   : > { %p57_p5 = scmp.ne.s32.totalorder %s1922_s22, %s1918_s21  ;;  %p186_p4 = scmp.eq.s32.totalorder %s1260_s29, 3 }
  0x59   : > { %p192_p8 = scmp.eq.s32.totalorder %s1261_s12, 3  ;;  %s2407_s8 = smov (%p39_p2, %s2405_s8), 0 }
  0x5a   : > { %p2130_p7 = por %p2043_p1, %p57_p5  ;;  %2388 = sst [smem:[#allocation20_spill]] %s2407_s8 }
  0x5b   : > { %p2136_p9 = por %p186_p4, %p51_p12  ;;  %p2140_p10 = por %p192_p8, %p57_p5 }
  0x5c   : > { %s41_s17 = ssub.s32 %s1942_s27, %s2407_s8  ;;  %p1529_p11 = scmp.lt.s32.totalorder %s1946_s28, 4 }
  0x5d   : > { %s2389_s20 = scalar_select %p2136_p9, 1, 0 }
  0x5e   : > { %s2390_s16 = scalar_select %p2140_p10, 1, 0 }
  0x5f   : > { %p42_p6 = scmp.eq.s32.totalorder %s41_s17, 0  ;;  %s277_s29 = sand.u32 1, %s1926_s23  }
  0x60   : > { %s1269_s18 = sshll.u32 %s277_s29, 3  ;;  %s1270_s11 = sshll.u32 %s1942_s27, 7 }
  0x61   : > { %s2149_s13 = scalar_select %p42_p6, %s1926_s23, %s44_s15  }
  0x62   : > { %s286_s1 = scalar_lea.hbm %s2363_s0, %s1270_s11  ;;  %s281_s2 = scalar_lea.vmem [#allocation3], %s1269_s18 }
  0x63   : > { %s288_s3 = sshll.u32 %s281_s2, 4  ;;  %p2157_p12 = pnand %p1529_p11, %p2120_p0  ;;  %s289_s3 = int_to_ptr.vmem [resolvable:$true] %s288_s3 }
  0x64   : > { %s278_s5 = scalar_lea.sflag [#allocation4], %s277_s29  ;;  %s1823_s17 = scalar_lea.vmem %s289_s3, 128 }
  0x65   : > { %p1812_p13 = pneg %p2157_p12  ;;  %p1824_p5 = scmp.ne.s32.totalorder %s289_s3, %s1823_s17 }
  0x66   : > { %s1959_s15 = smov [#allocation3]  }
  0x67   : > { %p1826_p2 = pnand %p1824_p5, %p1812_p13  ;;  %s1828_s8 = sshll.u32 %s1959_s15, 4  ;;  %s1829_s8 = int_to_ptr.vmem [resolvable:$false] %s1828_s8 }
  0x68   : > { %s1830_s11 = scalar_lea.vmem %s1829_s8, 256  ;;  %p1831_p8 = scmp.lt.s32.totalorder %s289_s3, %s1829_s8 }
  0x69   : > { %p1827_p4 = pneg %p1826_p2  ;;  %p1832_p6 = scmp.lt.s32.totalorder %s1830_s11, %s1823_s17 }
  0x6b   : > { %p1833_p10 = por %p1832_p6, %p1831_p8 }
  0x6d   : > { %p1834_p9 = pnand %p1833_p10, %p1827_p4 }
  0x6f   : > { %1837 = shalt.err (!%p1834_p9)
}
  0x70   : > { %1519 = dma.hbm_to_vmem [thread:$0]  (!%p2157_p12), %s286_s1, 128, %s289_s3, %s278_s5  }
  0x71   : > { %297 = sbr.rel (%p2048_p3) target bundleno = 2046 (0x7fe), region = 44  ;;  %s2168_s2 = sand.u32 (!%p2048_p3), 1, %s1922_s22  }
  0x72   : > { %s1272_s10 = sshll.u32 (!%p2048_p3), %s2168_s2, 3  ;;  %s300_s29 = scalar_lea.sflag (!%p2048_p3), [#allocation4], %s2168_s2 }
  0x73   : > { %s303_s18 = scalar_lea.vmem (!%p2048_p3), [#allocation3], %s1272_s10 }
  0x76   : > { %1897 = dma.done.wait (%p2130_p7), %s300_s29, 128  }
  0x77   : > { %1899 = vsyncadd (%p2130_p7), %s300_s29, 4294967168 }
  0x78   : > { %1901 = dma.done.wait (%p2043_p1), [#allocation7], 8192  }
  0x79   : > { %1903 = vsyncadd (%p2043_p1), [#allocation7], 4294959104 }
  0x7a   : > { %1905 = dma.done.wait (%p2043_p1), [#allocation10], 4096  }
  0x7b   : > { %1907 = vsyncadd (%p2043_p1), [#allocation10], 4294963200 }
  0x7c   : > { %1909 = dma.done.wait (%p2043_p1), [#allocation13], 256  }
  0x7d   : > { %1911 = vsyncadd (%p2043_p1), [#allocation13], 4294967040  ;;  %s2188_s1 = scalar_lea.vmem [#allocation14], %s1272_s10  ;;  %p1279_p3 = scmp.ne.s32.totalorder %s1930_s24, 0 }
  0x7f   : > { %356 = sbr.rel (%p1279_p3) target bundleno = 134 (0x86), region = 72 }
  0x84   : > { %v357_v0 = vld [vmem:[%s303_s18] sm:$0xff] }
  0x85   : > { %358 = vst [vmem:[#allocation2] sm:$0xff] %v357_v0 }
  0x86 PF: > { %s1340_s3 = smul.u32 192, %s1930_s24  ;;  %v1960_v1 = vmov 0   ;;  %v1961_v2 = vmov 0.0   ;;  %vm1962_vm0 = vmmov 0   ;;  %v663_v29 = vlaneseq  ;;  %s1285_s5 = sshll.u32 %s1930_s24, 3 }
  0x87   : > { %614 = vmatprep.mubr.bf16.mxu0 %v1960_v1  ;;  %1384 = vmatprep.subr.bf16.mxu1 %v1961_v2  ;;  %s452_s30 = scalar_lea.vmem [#allocation12], %s1285_s5  ;;  %vm744_vm1 = vcmask 1043456   ;;  %vm728_vm3 = vcmask 64512   ;;  %s2257_s7 = sshll.u32 %s1930_s24, 6 }
  0x88   : > { %s2193_s4 = scalar_lea.vmem [#allocation6], %s1340_s3  ;;  %1400 = vmatprep.mubr.msk.bf16.mxu1 %vm1962_vm0, %v1961_v2  ;;  %v2239_v30 = vshrl.u32 %v663_v29, 7  ;;  %v2242_v32 = vld [vmem:[%s452_s30] sm:$0xff]  ;;  %v725_v53 = vand.u32 127, %v663_v29  ;;  %s398_s8 = scalar_lea.vmem [#allocation8], %s2257_s7 }
  0x89   : > { %v1614_v3 = vld [vmem:[%s2193_s4 + $0xac] ss:$12 sps:$4 sm:$0xff]   ;;  %v1616_v4 = vld [vmem:[%s2193_s4 + $0xa8] ss:$12 sps:$4 sm:$0xff]   ;;  %v1619_v6 = vld [vmem:[%s2193_s4 + $0x90] ss:$12 sps:$4 sm:$0xff]  }
  0x8a   : > { %582 = vmatprep.subr.bf16.mxu0 %v1614_v3  ;;  %v1617_v5 = vld [vmem:[%s2193_s4 + $0x94] ss:$12 sps:$4 sm:$0xff]   ;;  %v1620_v7 = vld [vmem:[%s2193_s4 + $0x7c] ss:$12 sps:$4 sm:$0xff]   ;;  %v1622_v8 = vld [vmem:[%s2193_s4 + $0x78] ss:$12 sps:$4 sm:$0xff]   ;;  %vm726_vm2 = vcmp.le.s32.totalorder %v725_v53, %v2239_v30 }
  0x8b   : > { %583 = vmatpush1.bf16.msra.mxu0 %v1616_v4  ;;  %v1623_v9 = vld [vmem:[%s2193_s4 + $0x64] ss:$12 sps:$4 sm:$0xff]   ;;  %v1625_v10 = vld [vmem:[%s2193_s4 + $0x60] ss:$12 sps:$4 sm:$0xff]   ;;  %v1628_v14 = vld [vmem:[%s2193_s4 + $0x48] ss:$12 sps:$4 sm:$0xff]  }
  0x8c   : > { %584 = vmatprep.subr.bf16.mxu0 %v1617_v5  ;;  %v1638_v11 = vld [vmem:[%s2193_s4 + $0xb0] ss:$12 sps:$4 sm:$0xff]   ;;  %v1626_v12 = vld [vmem:[%s2193_s4 + $0x4c] ss:$12 sps:$4 sm:$0xff]   ;;  %v1629_v15 = vld [vmem:[%s2193_s4 + $0x34] ss:$12 sps:$4 sm:$0xff]  }
  0x8d   : > { %1385 = vmatpush3.bf16.msra.mxu1 %v1638_v11  ;;  %v1639_v13 = vld [vmem:[%s2193_s4 + $0x98] ss:$12 sps:$4 sm:$0xff]   ;;  %v1640_v16 = vld [vmem:[%s2193_s4 + $0x80] ss:$12 sps:$4 sm:$0xff]   ;;  %v1631_v17 = vld [vmem:[%s2193_s4 + $0x30] ss:$12 sps:$4 sm:$0xff]  }
  0x8e   : > { %1386 = vmatprep.subr.bf16.mxu1 %v1961_v2  ;;  %v1632_v18 = vld [vmem:[%s2193_s4 + $0x1c] ss:$12 sps:$4 sm:$0xff]   ;;  %v1634_v20 = vld [vmem:[%s2193_s4 + $0x18] ss:$12 sps:$4 sm:$0xff]   ;;  %v1637_v23 = vld [vmem:[%s2193_s4] ss:$12 sps:$4 sm:$0xff]  }
  0x8f   : > { %585 = vmatpush1.bf16.msra.mxu0 %v1619_v6  ;;  %v1641_v19 = vld [vmem:[%s2193_s4 + $0x68] ss:$12 sps:$4 sm:$0xff]   ;;  %v1635_v21 = vld [vmem:[%s2193_s4 + $0x4] ss:$12 sps:$4 sm:$0xff]   ;;  %v1644_v27 = vld [vmem:[%s2193_s4 + $0x20] ss:$12 sps:$4 sm:$0xff]  }
  0x90   : > { %586 = vmatprep.subr.bf16.mxu0 %v1620_v7  ;;  %v1642_v22 = vld [vmem:[%s2193_s4 + $0x50] ss:$12 sps:$4 sm:$0xff]   ;;  %v2220_v24 = vld [vmem:[#allocation2] sm:$0xff]  ;;  %v1645_v28 = vld [vmem:[%s2193_s4 + $0x8] ss:$12 sps:$4 sm:$0xff]   ;;  %v671_v31 = vsub.s32 1, %v2239_v30 }
  0x91   : > { %1387 = vmatpush3.bf16.msra.mxu1 %v1639_v13  ;;  %v1643_v25 = vld [vmem:[%s2193_s4 + $0x38] ss:$12 sps:$4 sm:$0xff]   ;;  %v360_v26 = vpack.c.bf16 %v2220_v24, %v2220_v24  ;;  %v665_v35 = vsub.s32 0, %v2239_v30  ;;  %v677_v44 = vsub.s32 2, %v2239_v30  ;;  %v1647_v4 = vld [vmem:[%s398_s8 + $0x30] sm:$0xff]   ;;  %v1648_v5 = vld [vmem:[%s398_s8 + $0x28] sm:$0xff]  }
  0x92   : > { %1388 = vmatprep.subr.bf16.mxu1 %v1961_v2  ;;  %v672_v33 = vrot.slane %v2242_v32, %v671_v31  ;;  %v1646_v3 = vld [vmem:[%s398_s8 + $0x38] sm:$0xff]   ;;  %v1649_v6 = vld [vmem:[%s398_s8 + $0x20] sm:$0xff]   ;;  %s416_s9 = scalar_lea.vmem [#allocation9], %s2257_s7  ;;  %s2289_s14 = scalar_lea.vmem [#allocation11], %s2257_s7 }
  0x93   : > { %587 = vmatpush1.bf16.msra.mxu0 %v1622_v8  ;;  %v666_v38 = vrot.slane %v2242_v32, %v665_v35  ;;  %v678_v45 = vrot.slane %v2242_v32, %v677_v44  ;;  %v1650_v7 = vld [vmem:[%s398_s8 + $0x18] sm:$0xff]   ;;  %v1651_v8 = vld [vmem:[%s398_s8 + $0x10] sm:$0xff]   ;;  %p1335_p1 = scmp.ne.s32.totalorder %s1930_s24, 1 }
  0x94   : > { %588 = vmatprep.subr.bf16.mxu0 %v1623_v9  ;;  %v1652_v9 = vld [vmem:[%s398_s8 + $0x8] sm:$0xff]   ;;  %v1654_v29 = vld [vmem:[%s416_s9 + $0x38] sm:$0xff]   ;;  %v1655_v31 = vld [vmem:[%s416_s9 + $0x30] sm:$0xff]  }
  0x95   : > { %1389 = vmatpush3.bf16.msra.mxu1 %v1640_v16 }
  0x96   : > { %1390 = vmatprep.subr.bf16.mxu1 %v1961_v2 }
  0x97   : > { %589 = vmatpush1.bf16.msra.mxu0 %v1625_v10 }
  0x98   : > { %590 = vmatprep.subr.bf16.mxu0 %v1626_v12 }
  0x99   : > { %1391 = vmatpush3.bf16.msra.mxu1 %v1641_v19 }
  0x9a   : > { %1392 = vmatprep.subr.bf16.mxu1 %v1961_v2 }
  0x9b   : > { %591 = vmatpush1.bf16.msra.mxu0 %v1628_v14  ;;  %v1653_v14 = vld [vmem:[%s398_s8] sm:$0xff]  }
  0x9c   : > { %592 = vmatprep.subr.bf16.mxu0 %v1629_v15 }
  0x9d   : > { %1393 = vmatpush3.bf16.msra.mxu1 %v1642_v22 }
  0x9e   : > { %1394 = vmatprep.subr.bf16.mxu1 %v1961_v2 }
  0x9f   : > { %593 = vmatpush1.bf16.msra.mxu0 %v1631_v17 }
  0xa0   : > { %594 = vmatprep.subr.bf16.mxu0 %v1632_v18 }
  0xa1   : > { %1395 = vmatpush3.bf16.msra.mxu1 %v1643_v25 }
  0xa2   : > { %1396 = vmatprep.subr.bf16.mxu1 %v1961_v2 }
  0xa3   : > { %595 = vmatpush1.bf16.msra.mxu0 %v1634_v20  ;;  %v791_v20 = vsub.s32 3, %v2239_v30 }
  0xa4   : > { %596 = vmatprep.subr.bf16.mxu0 %v1635_v21 }
  0xa5   : > { %1397 = vmatpush3.bf16.msra.mxu1 %v1644_v27  ;;  %v792_v21 = vrot.slane %v2242_v32, %v791_v20 }
  0xa6   : > { %1398 = vmatprep.subr.bf16.mxu1 %v1961_v2 }
  0xa7   : > { %597 = vmatpush1.bf16.msra.mxu0 %v1637_v23 }
  0xa8   : > { %1416 = vmatprep.subr.bf16.mxu0 %v1961_v2 }
  0xa9   : > { %1399 = vmatpush3.bf16.msra.mxu1 %v1645_v28 }
  0xaa   : > { %615 = vmatmul.mubr.bf16.vlgmr.msra.gmra.mxu0 %v360_v26  ;;  %1404 = vmatprep.subr.bf16.mxu1 %v1961_v2 }
  0xab   : > { %1432 = vmatprep.mubr.msk.bf16.mxu0 %vm1962_vm0, %v1961_v2  ;;  %1417 = vmatpush3.bf16.msra.mxu0 %v1646_v3 }
  0xac   : > { %1401 = vmatmul.mubr.bf16.vlgmr.msra.gmra.mxu1 %v360_v26  ;;  %1418 = vmatprep.subr.bf16.mxu0 %v1961_v2 }
  0xad   : > { %1406 = vmatprep.mubr.msk.bf16.mxu1 %vm1962_vm0, %v1961_v2 }
  0xaf   : > { %1419 = vmatpush3.bf16.msra.mxu0 %v1647_v4 }
  0xb0   : > { %1420 = vmatprep.subr.bf16.mxu0 %v1961_v2 }
  0xb3   : > { %1421 = vmatpush3.bf16.msra.mxu0 %v1648_v5 }
  0xb4   : > { %1422 = vmatprep.subr.bf16.mxu0 %v1961_v2 }
  0xb7   : > { %1423 = vmatpush3.bf16.msra.mxu0 %v1649_v6 }
  0xb8   : > { %1424 = vmatprep.subr.bf16.mxu0 %v1961_v2 }
  0xbb   : > { %1425 = vmatpush3.bf16.msra.mxu0 %v1650_v7 }
  0xbc   : > { %1426 = vmatprep.subr.bf16.mxu0 %v1961_v2 }
  0xbf   : > { %1427 = vmatpush3.bf16.msra.mxu0 %v1651_v8 }
  0xc0   : > { %1428 = vmatprep.subr.bf16.mxu0 %v1961_v2 }
  0xc3   : > { %1429 = vmatpush3.bf16.msra.mxu0 %v1652_v9 }
  0xc4   : > { %1430 = vmatprep.subr.bf16.mxu0 %v1961_v2 }
  0xc7   : > { %1431 = vmatpush3.bf16.msra.mxu0 %v1653_v14 }
  0xc8   : > { %1456 = vmatprep.subr.bf16.mxu0 %v1961_v2 }
 0x16a   : > { %v616_v34 = vpop.f32.mrf.mxu0 }
 0x16b   : > { %v667_v42 = vadd.f32 %v666_v38, %v616_v34  ;;  %v1658_v38 = vld [vmem:[%s416_s9 + $0x18] sm:$0xff]  }
 0x16c   : > { %v618_v36 = vpop.f32.mrf.mxu0  ;;  %v657_v46 = vpop.f32.mrf.mxu1 }
 0x16d   : > { %v673_v37 = vadd.f32 %v672_v33, %v618_v36  ;;  %v668_v43 = vpack.c.bf16 %v667_v42, %v667_v42  ;;  %v679_v47 = vadd.f32 %v678_v45, %v657_v46  ;;  %v1662_v42 = vld [vmem:[%s2289_s14 + $0x38] sm:$0xff]  }
 0x16e   : > { %v620_v39 = vpop.f32.mrf.mxu0  ;;  %v1402_v48 = vpop.f32.mrf.mxu1 }
 0x16f   : > { %v674_v40 = vpack.c.bf16 %v673_v37, %v673_v37  ;;  %v680_v49 = vpack.c.bf16 %v679_v47, %v679_v47  ;;  %v1657_v37 = vld [vmem:[%s416_s9 + $0x20] sm:$0xff]   ;;  %v1659_v39 = vld [vmem:[%s416_s9 + $0x10] sm:$0xff]   ;;  %v896_v47 = vsub.s32 4, %v2239_v30  ;;  %v901_v48 = vsub.s32 5, %v2239_v30 }
 0x170   : > { %v621_v41 = vpop.f32.mrf.mxu0  ;;  %v660_v50 = vpop.f32.mrf.mxu1 }
 0x171   : > { %1405 = vmatpush3.bf16.xpose.msra.mxu1 %v674_v40  ;;  %v746_v51 = vsel %vm744_vm1, %v680_v49, 0  ;;  %v1660_v40 = vld [vmem:[%s416_s9 + $0x8] sm:$0xff]   ;;  %v1661_v41 = vld [vmem:[%s416_s9] sm:$0xff]   ;;  %v897_v49 = vrot.slane %v2242_v32, %v896_v47 }
 0x172   : > { %1410 = vmatprep.subr.bf16.mxu1 %v1961_v2  ;;  %v1403_v52 = vpop.f32.mrf.mxu1 }
 0x173   : > { %v902_v52 = vrot.slane %v2242_v32, %v901_v48 }
 0x178   : > { %1407 = vmatmul.mubr.bf16.vlgmr.msra.gmra.mxu1 %v668_v43  ;;  %v1663_v43 = vld [vmem:[%s2289_s14 + $0x30] sm:$0xff]  }
 0x179   : > { %1412 = vmatprep.mubr.msk.bf16.mxu1 %vm1962_vm0, %v1961_v2  ;;  %1411 = vmatpush3.bf16.msra.mxu1 %v746_v51 }
 0x17a   : > { %1436 = vmatprep.subr.bf16.mxu1 %v1961_v2 }
 0x238   : > { %v715_v54 = vpop.f32.mrf.mxu1 }
 0x239   : > { %v721_v55 = vmul.f32 0.088388346, %v715_v54 }
 0x23a   : > { %v1408_v56 = vpop.f32.mrf.mxu1 }
 0x23b   : > { %v727_v57 = vsel %vm726_vm2, %v721_v55, -1e+09  ;;  %v1664_v56 = vld [vmem:[%s2289_s14 + $0x28] sm:$0xff]  }
 0x23c   : > { %v718_v58 = vpop.f32.mrf.mxu1  ;;  %v729_v59 = vsel %vm728_vm3, %v727_v57, -inf }
 0x23d   : > { %730 = vmax.xlane.f32.xlu0 %v729_v59  ;;  %v1666_v58 = vld [vmem:[%s2289_s14 + $0x18] sm:$0xff]   ;;  %v1667_v59 = vld [vmem:[%s2289_s14 + $0x10] sm:$0xff]  }
 0x23e   : > { %v1409_v60 = vpop.f32.mrf.mxu1 }
 0x23f   : > { %v1668_v60 = vld [vmem:[%s2289_s14 + $0x8] sm:$0xff]  }
 0x2c6   : > { %v731_v61 = vpop.xlane.xlu0 %730 }
 0x2c7   : > { %v732_v62 = vsub.f32 %v727_v57, %v731_v61  ;;  %v1665_v57 = vld [vmem:[%s2289_s14 + $0x20] sm:$0xff]  }
 0x2c8   : > { %v1669_v61 = vld [vmem:[%s2289_s14] sm:$0xff]  }
 0x2c9   : > { %v733_v63 = vmul.f32 1.442695, %v732_v62  ;;  %v907_v62 = vsub.s32 6, %v2239_v30 }
 0x2cb   : > { %1670 = vpow2.f32 %v733_v63  ;;  %v908_v63 = vrot.slane %v2242_v32, %v907_v62 }
 0x2d8   : > { %v1671_v0 = vpop.eup %1670 }
 0x2d9   : > { %v735_v1 = vsel %vm728_vm3, %v1671_v0, 0.0 }
 0x2da   : > { %736 = vadd.xlane.f32.xlu0 %v735_v1 }
 0x363   : > { %v737_v10 = vpop.xlane.xlu0 %736 }
 0x364   : > { %1672 = vrcp.f32 %v737_v10 }
 0x371   : > { %v1673_v11 = vpop.eup %1672 }
 0x372   : > { %v739_v12 = vmul.f32 %v1673_v11, %v1671_v0 }
 0x374   : > { %v740_v13 = vpack.c.bf16 %v739_v12, %v739_v12 }
 0x376   : > { %1413 = vmatmul.mubr.msk.bf16.vlgmr.msra.gmra.mxu1 %vm728_vm3, %v740_v13 }
 0x377   : > { %1452 = vmatprep.mubr.msk.bf16.mxu1 %vm1962_vm0, %v1961_v2  ;;  %1437 = vmatpush3.bf16.msra.mxu1 %v1654_v29 }
 0x378   : > { %1438 = vmatprep.subr.bf16.mxu1 %v1961_v2 }
 0x37b   : > { %1439 = vmatpush3.bf16.msra.mxu1 %v1655_v31 }
 0x37c   : > { %1440 = vmatprep.subr.bf16.mxu1 %v1961_v2 }
 0x436   : > { %v782_v15 = vpop.f32.mrf.mxu1 }
 0x437   : > { %v788_v16 = vpack.c.bf16 %v782_v15, %v782_v15 }
 0x438   : > { %v1414_v17 = vpop.f32.mrf.mxu1 }
 0x439   : > { %1433 = vmatmul.mubr.bf16.vlgmr.msra.gmra.mxu0 %v788_v16 }
 0x43a   : > { %v785_v18 = vpop.f32.mrf.mxu1  ;;  %1472 = vmatprep.mubr.msk.bf16.mxu0 %vm1962_vm0, %v1961_v2  ;;  %1457 = vmatpush3.bf16.msra.mxu0 %v1662_v42 }
 0x43b   : > { %1458 = vmatprep.subr.bf16.mxu0 %v1961_v2 }
 0x43c   : > { %v1415_v19 = vpop.f32.mrf.mxu1 }
 0x43e   : > { %1459 = vmatpush3.bf16.msra.mxu0 %v1663_v43 }
 0x43f   : > { %1460 = vmatprep.subr.bf16.mxu0 %v1961_v2 }
 0x442   : > { %1461 = vmatpush3.bf16.msra.mxu0 %v1664_v56 }
 0x443   : > { %1462 = vmatprep.subr.bf16.mxu0 %v1961_v2 }
 0x446   : > { %1463 = vmatpush3.bf16.msra.mxu0 %v1665_v57 }
 0x447   : > { %1464 = vmatprep.subr.bf16.mxu0 %v1961_v2 }
 0x44a   : > { %1465 = vmatpush3.bf16.msra.mxu0 %v1666_v58 }
 0x44b   : > { %1466 = vmatprep.subr.bf16.mxu0 %v1961_v2 }
 0x44e   : > { %1467 = vmatpush3.bf16.msra.mxu0 %v1667_v59 }
 0x44f   : > { %1468 = vmatprep.subr.bf16.mxu0 %v1961_v2 }
 0x452   : > { %1469 = vmatpush3.bf16.msra.mxu0 %v1668_v60 }
 0x453   : > { %1470 = vmatprep.subr.bf16.mxu0 %v1961_v2 }
 0x456   : > { %1471 = vmatpush3.bf16.msra.mxu0 %v1669_v61 }
 0x4f9   : > { %v875_v22 = vpop.f32.mrf.mxu0 }
 0x4fa   : > { %v876_v23 = vadd.f32 %v875_v22, %v792_v21 }
 0x4fb   : > { %v1434_v25 = vpop.f32.mrf.mxu0 }
 0x4fc   : > { %v2276_v26 = vadd.f32 %v876_v23, %v2220_v24  ;;  %v1656_v24 = vld [vmem:[%s416_s9 + $0x28] sm:$0xff]  }
 0x4fd   : > { %v878_v27 = vpop.f32.mrf.mxu0  ;;  %1441 = vmatpush3.bf16.msra.mxu1 %v1656_v24 }
 0x4fe   : > { %882 = vadd.xlane.f32.xlu1 %v2276_v26  ;;  %1442 = vmatprep.subr.bf16.mxu1 %v1961_v2 }
 0x4ff   : > { %v1435_v28 = vpop.f32.mrf.mxu0 }
 0x501   : > { %1443 = vmatpush3.bf16.msra.mxu1 %v1657_v37 }
 0x502   : > { %1444 = vmatprep.subr.bf16.mxu1 %v1961_v2 }
 0x505   : > { %1445 = vmatpush3.bf16.msra.mxu1 %v1658_v38 }
 0x506   : > { %1446 = vmatprep.subr.bf16.mxu1 %v1961_v2 }
 0x509   : > { %1447 = vmatpush3.bf16.msra.mxu1 %v1659_v39 }
 0x50a   : > { %1448 = vmatprep.subr.bf16.mxu1 %v1961_v2 }
 0x50d   : > { %1449 = vmatpush3.bf16.msra.mxu1 %v1660_v40 }
 0x50e   : > { %1450 = vmatprep.subr.bf16.mxu1 %v1961_v2  ;;  %v1005_v2 = vsub.s32 7, %v2239_v30 }
 0x510   : > { %v1006_v12 = vrot.slane %v2242_v32, %v1005_v2 }
 0x511   : > { %1451 = vmatpush3.bf16.msra.mxu1 %v1661_v41 }
 0x587   : > { %v883_v33 = vpop.xlane.xlu1 %882 }
 0x588   : > { %v885_v34 = vmul.f32 0.0078125, %v883_v33 }
 0x58a   : > { %v886_v35 = vsub.f32 %v2276_v26, %v885_v34 }
 0x58c   : > { %v887_v36 = vmul.f32 %v886_v35, %v886_v35 }
 0x58e   : > { %888 = vadd.xlane.f32.xlu1 %v887_v36 }
 0x617   : > { %v889_v44 = vpop.xlane.xlu1 %888 }
 0x618   : > { %v890_v45 = vmul.f32 0.0078125, %v889_v44 }
 0x61a   : > { %v891_v46 = vadd.f32 1e-05, %v890_v45 }
 0x61c   : > { %1674 = vrsqrt.f32 %v891_v46 }
 0x629   : > { %v1675_v50 = vpop.eup %1674 }
 0x62a   : > { %v893_v51 = vmul.f32 %v1675_v50, %v886_v35 }
 0x62c   : > { %v898_v53 = vmul.f32 %v897_v49, %v893_v51 }
 0x62e   : > { %v903_v54 = vadd.f32 %v902_v52, %v898_v53 }
 0x630   : > { %v904_v55 = vpack.c.bf16 %v903_v54, %v903_v54 }
 0x632   : > { %1453 = vmatmul.mubr.bf16.vlgmr.msra.gmra.mxu1 %v904_v55 }
 0x6f2   : > { %v991_v0 = vpop.f32.mrf.mxu1 }
 0x6f3   : > { %v992_v1 = vadd.f32 %v991_v0, %v908_v63 }
 0x6f4   : > { %v1454_v3 = vpop.f32.mrf.mxu1 }
 0x6f5   : > { %v998_v4 = vmul.f32 0.70710677, %v992_v1  ;;  %v997_v8 = vmul.f32 0.5, %v992_v1 }
 0x6f6   : > { %v994_v5 = vpop.f32.mrf.mxu1 }
 0x6f7   : > { %1676 = verf.f32 %v998_v4 }
 0x6f8   : > { %v1455_v6 = vpop.f32.mrf.mxu1 }
 0x704   : > { %v1677_v7 = vpop.eup %1676 }
 0x705   : > { %v1000_v9 = vadd.f32 1.0, %v1677_v7 }
 0x707   : > { %v1001_v10 = vmul.f32 %v1000_v9, %v997_v8 }
 0x709   : > { %v1002_v11 = vpack.c.bf16 %v1001_v10, %v1001_v10 }
 0x70b   : > { %1473 = vmatmul.mubr.bf16.vlgmr.msra.gmra.mxu0 %v1002_v11 }
 0x7cb   : > { %v1089_v13 = vpop.f32.mrf.mxu0 }
 0x7cc   : > { %v1090_v14 = vadd.f32 %v1089_v13, %v1006_v12 }
 0x7cd   : > { %v1474_v15 = vpop.f32.mrf.mxu0 }
 0x7ce   : > { %v1096_v16 = vmul.f32 0.70710677, %v1090_v14  ;;  %v1095_v20 = vmul.f32 0.5, %v1090_v14 }
 0x7cf   : > { %v1092_v17 = vpop.f32.mrf.mxu0 }
 0x7d0   : > { %1678 = verf.f32 %v1096_v16 }
 0x7d1   : > { %v1475_v18 = vpop.f32.mrf.mxu0 }
 0x7dd   : > { %v1679_v19 = vpop.eup %1678 }
 0x7de   : > { %v1098_v21 = vadd.f32 1.0, %v1679_v19 }
 0x7e0   : > { %v1099_v22 = vmul.f32 %v1098_v21, %v1095_v20  ;;  %1105 = sbr.rel (%p1335_p1) target bundleno = 2022 (0x7e6), region = 76 }
 0x7e2   : > { %v1100_v23 = vadd.f32 %v1099_v22, %v2276_v26 }
 0x7e4   : > { %1101 = vst [vmem:[#allocation2] sm:$0xff] %v1100_v23 }
 0x7e5   : > { %1106 = vst [vmem:[%s2188_s1] sm:$0xff] %v1100_v23 }
 0x7e6 PF: > { %s1337_s12 = sshll.u32 %s1934_s25, 7  ;;  %s1121_s10 = sshll.u32 %s2188_s1, 4  ;;  %s1122_s10 = int_to_ptr.vmem [resolvable:$true] %s1121_s10 }
 0x7e7   : > { %s1119_s11 = scalar_lea.hbm %s2369_s6, %s1337_s12  ;;  %s1108_s29 = scalar_lea.sflag [#allocation5], %s2168_s2 }
 0x7e8   : > { %s1838_s18 = scalar_lea.vmem %s1122_s10, 128  ;;  %p2392_p7 = scmp.ne.s32.totalorder %s2389_s20, 0 }
 0x7e9   : > { %p1839_p0 = scmp.ne.s32.totalorder %s1122_s10, %s1838_s18  ;;  %s1963_s24 = smov [#allocation14]  }
 0x7ea   : > { %s1842_s3 = sshll.u32 %s1963_s24, 4  ;;  %s1843_s3 = int_to_ptr.vmem [resolvable:$false] %s1842_s3 }
 0x7eb   : > { %p1840_p9 = pnand %p1839_p0, %p2392_p7  ;;  %s1844_s4 = scalar_lea.vmem %s1843_s3, 256 }
 0x7ec   : > { %p1845_p11 = scmp.lt.s32.totalorder %s1122_s10, %s1843_s3  ;;  %p1846_p12 = scmp.lt.s32.totalorder %s1844_s4, %s1838_s18 }
 0x7ed   : > { %p1841_p10 = pneg %p1840_p9 }
 0x7ee   : > { %p1847_p13 = por %p1846_p12, %p1845_p11 }
 0x7f0   : > { %p1848_p5 = pnand %p1847_p13, %p1841_p10 }
 0x7f2   : > { %1851 = shalt.err (!%p1848_p5)
}
 0x7f3   : > { %s1852_s25 = scalar_lea.hbm %s1119_s11, 128  ;;  %s1856_s5 = scalar_lea.hbm %s2369_s6, 256 }
 0x7f4   : > { %p1853_p2 = scmp.ne.s32.totalorder %s1119_s11, %s1852_s25  ;;  %p1857_p6 = scmp.lt.s32.totalorder %s1119_s11, %s2369_s6 }
 0x7f5   : > { %p1858_p3 = scmp.lt.s32.totalorder %s1856_s5, %s1852_s25 }
 0x7f6   : > { %p1854_p4 = pnand %p1853_p2, %p2392_p7 }
 0x7f7   : > { %p1859_p1 = por %p1858_p3, %p1857_p6 }
 0x7f8   : > { %p1855_p8 = pneg %p1854_p4 }
 0x7fa   : > { %p1860_p0 = pnand %p1859_p1, %p1855_p8 }
 0x7fc   : > { %1863 = shalt.err (!%p1860_p0)
}
 0x7fd   : > { %1498 = dma.vmem_to_hbm [thread:$0]  (%p2392_p7), %s1122_s10, 128, %s1119_s11, %s1108_s29  }
 0x7fe PF: > { %p1535_p9 = scmp.ge.s32.totalorder %s1946_s28, 2  ;;  %s1133_s8 = sand.u32 1, %s1918_s21  }
 0x7ff   : > { %p2393_p10 = scmp.ne.s32.totalorder %s2390_s16, 0  ;;  %s1134_s9 = scalar_lea.sflag [#allocation5], %s1133_s8 }
 0x801   : > { %p1521_p11 = pnand %p1535_p9, %p2393_p10 }
 0x803   : > { %p1522_p12 = pneg %p1521_p11 }
 0x805   : > { %1913 = dma.done.wait (%p1522_p12), %s1134_s9, 128  }
 0x806   : > { %1915 = vsyncadd (%p1522_p12), %s1134_s9, 4294967168  ;;  %s25_s28 = sadd.s32 1, %s1946_s28   ;;  %s2394_s20 = sld [smem:[#allocation20_spill]] }
 0x807   : > { %p22_p13 = scmp.ge.s32.totalorder %s25_s28, 6   ;;  %s2395_s21 = smov %s1922_s22 }
 0x808   : > { %s2396_s22 = smov %s1926_s23  ;;  %s2397_s23 = smov %s2149_s13 }
 0x809   : > { %s2398_s24 = smov %s1938_s26  ;;  %s2399_s25 = smov %s1942_s27 }
 0x80a   : > { %s2400_s26 = smov %s2403_s19  ;;  %24 = sbr.rel (!%p22_p13) target bundleno = 16 (0x10), region = 122 }
 0x80c   : > { %s2401_s27 = smov %s2394_s20 }
 0x80f   :  { %1139 = vsyncpa [#allocation4], 1 }
 0x810   :  { %1141 = vsyncpa [#allocation4 + $0x1], 1 }
 0x811   :  { %1142 = vsyncpa [#allocation7], 1 }
 0x812   :  { %1143 = vsyncpa [#allocation10], 1 }
 0x813   :  { %1144 = vsyncpa [#allocation13], 1 }
 0x814   :  { %1145 = vsyncpa [#allocation5], 1 }
 0x815   :  { %1147 = vsyncpa [#allocation5 + $0x1], 1 }

</bundles_post_ra>
